<compile_context>
chip_gen: v7x
topology: tpu7x:2x2x1
jax: 0.10.0
libtpu: 0.0.40
codegen_flags: <defaults>
</compile_context>

<pallas_src>
import functools

import jax
import jax.numpy as jnp
from jax.experimental import pallas as pl
from jax.experimental.pallas import tpu as pltpu


def _label_smoothing_kernel(x_ref, t_ref, out_ref, *, confidence, smoothing,
                            n_rows, tile_n, num_classes, needs_mask,
                            use_mxu_row_sums):
    i = pl.program_id(0)

    x = x_ref[...]                                    # (TILE_N, C) native dtype
    tgt = t_ref[...]                                  # (TILE_N, 1) int32

    # Row max in the native dtype (bf16 VALU on v6e/v7x); promote only the
    # exp / accumulation path to f32 — never a full f32 copy of the tile.
    m = jnp.max(x, axis=-1, keepdims=True)            # (TILE_N, 1)
    xm = (x - m).astype(jnp.float32)                  # (TILE_N, C) f32
    ex = jnp.exp(xm)                                  # (TILE_N, C) f32

    if use_mxu_row_sums:
        # v7x: offload plain row sums to the otherwise-idle MXU slot.
        ones = jnp.ones((num_classes, 1), jnp.float32)
        sum_ex = jnp.dot(ex, ones, preferred_element_type=jnp.float32)
        sum_xm = jnp.dot(xm, ones, preferred_element_type=jnp.float32)
    else:
        sum_ex = jnp.sum(ex, axis=-1, keepdims=True)  # (TILE_N, 1) f32
        sum_xm = jnp.sum(xm, axis=-1, keepdims=True)  # (TILE_N, 1) f32

    lse = jnp.log(sum_ex)                             # logsumexp(x) - m

    # (x - m)[row, target[row]] via one-hot select (no dynamic gather on TPU).
    cols = jax.lax.broadcasted_iota(jnp.int32, xm.shape, 1)
    xm_tgt = jnp.sum(jnp.where(cols == tgt, xm, 0.0), axis=-1, keepdims=True)

    # conf*(log_z - x_tgt) + smooth*(log_z - sum_x/C); the row max m cancels,
    # divides folded into trace-time constants.
    loss = ((confidence + smoothing) * lse
            - confidence * xm_tgt
            - (smoothing / num_classes) * sum_xm)     # (TILE_N, 1) f32

    if needs_mask:
        last = pl.num_programs(0) - 1

        @pl.when(i == last)
        def _tail():
            # Mask rows past the true batch size (padded tail tile).  Keep the
            # select form: garbage rows may hold NaN/Inf and a `loss * mask`
            # rewrite would propagate them.
            row_ids = i * tile_n + jax.lax.broadcasted_iota(
                jnp.int32, loss.shape, 0)
            out_ref[...] = jnp.sum(jnp.where(row_ids < n_rows, loss, 0.0),
                                   axis=0, keepdims=True)

        @pl.when(i != last)
        def _full():
            out_ref[...] = jnp.sum(loss, axis=0, keepdims=True)
    else:
        out_ref[...] = jnp.sum(loss, axis=0, keepdims=True)


def _default_vmem_limit_bytes():
    """Generation-aware scoped-VMEM limit (leave headroom below physical)."""
    try:
        cap = getattr(pltpu.get_tpu_info(), "vmem_capacity_bytes", None)
    except Exception:
        cap = None
    if cap is None:
        cap = 64 << 20            # conservative: assume smallest (v7x-class) part
    if cap >= (128 << 20):        # v5e / v6e: 128 MiB physical
        return 100 << 20
    return 48 << 20               # v7x: 64 MiB physical


def _choose_tile_n(n, c, itemsize, vmem_limit_bytes):
    """Row tile sized so the resident working set fits the scoped VMEM limit.

    Per element of the (TILE_N, C) block we keep roughly:
      2 * itemsize   : BlockSpec double-buffering of the logits tile
      + ~12 bytes    : live f32 temporaries ((x - m), exp(x - m), one more)
    """
    headroom = 8 << 20
    budget = max(vmem_limit_bytes - headroom, 4 << 20)
    per_elem = 2 * itemsize + 12
    t = budget // (per_elem * max(1, c))
    t = max(8, min(1024, int(t)))     # >=1 vreg of sublanes; >~512 rows is near roofline
    t = (t // 8) * 8                  # sublane-aligned
    if t >= n:
        return n                      # single block == full array dims (always legal)
    return t


def label_smoothing_loss(x, target, smoothing=0.01, tile_n=None,
                         use_mxu_row_sums=False):
    """x: [N, C] float logits (f32 or bf16), target: [N] int class ids -> scalar f32."""
    n, c = x.shape
    confidence = 1.0 - smoothing
    vmem_limit = _default_vmem_limit_bytes()
    if tile_n is None:
        tile_n = _choose_tile_n(n, c, jnp.dtype(x.dtype).itemsize, vmem_limit)
    num_tiles = pl.cdiv(n, tile_n)
    needs_mask = (n % tile_n) != 0
    t2d = target.astype(jnp.int32).reshape(n, 1)

    kernel = functools.partial(
        _label_smoothing_kernel,
        confidence=confidence,
        smoothing=smoothing,
        n_rows=n,
        tile_n=tile_n,
        num_classes=c,
        needs_mask=needs_mask,
        use_mxu_row_sums=use_mxu_row_sums,
    )

    partials = pl.pallas_call(
        kernel,
        out_shape=jax.ShapeDtypeStruct((num_tiles, 1, 1), jnp.float32),
        grid=(num_tiles,),
        in_specs=[
            pl.BlockSpec((tile_n, c), lambda i: (i, 0)),   # logits tile
            pl.BlockSpec((tile_n, 1), lambda i: (i, 0)),   # target tile
        ],
        # Each grid step owns its own partial-sum block -> axis is "parallel"
        # (megacore shards row tiles across both TensorCores on v7x).
        out_specs=pl.BlockSpec((None, 1, 1), lambda i: (i, 0, 0)),
        compiler_params=pltpu.CompilerParams(
            dimension_semantics=("parallel",),
            vmem_limit_bytes=vmem_limit,
        ),
    )(x, t2d)

    # Tiny final reduce over per-tile partial sums -> batch mean.
    return jnp.sum(partials) / n


if __name__ == "__main__":
    key = jax.random.PRNGKey(0)
    kx, kt = jax.random.split(key)

    # Small shapes; N deliberately not a multiple of the tile so the
    # tail-row-masking (last-step pl.when) path is exercised.
    N, C = 20, 32
    x = jax.random.normal(kx, (N, C), dtype=jnp.float32)
    target = jax.random.randint(kt, (N,), 0, C, dtype=jnp.int32)
    smoothing = 0.01

    # Plain-JAX reference.
    log_probs = jax.nn.log_softmax(x, axis=-1)
    nll = -jnp.take_along_axis(log_probs, target[:, None], axis=-1)[:, 0]
    smooth = -jnp.mean(log_probs, axis=-1)
    ref = jnp.mean((1.0 - smoothing) * nll + smoothing * smooth)

    # Multi-tile path: 3 parallel tiles of 8 rows, masked tail tile.
    loss_tiled = jax.block_until_ready(
        label_smoothing_loss(x, target, smoothing=smoothing, tile_n=8))
    # Auto-sized path: single full-array tile, no masking.
    loss_auto = jax.block_until_ready(
        label_smoothing_loss(x, target, smoothing=smoothing))

    assert jnp.allclose(loss_tiled, ref, atol=1e-5, rtol=1e-5), (loss_tiled, ref)
    assert jnp.allclose(loss_auto, ref, atol=1e-5, rtol=1e-5), (loss_auto, ref)
    print("KERNEL_OK")
</pallas_src>

<mosaic_0001>
module attributes {stable_mosaic.version = 11 : i64} {
  func.func @_label_smoothing_kernel(%arg0: i32, %arg1: memref<8x32xf32, #tpu.memory_space<vmem>>, %arg2: memref<8x1xi32, #tpu.memory_space<vmem>>, %arg3: memref<1x1x1xf32, #tpu.memory_space<vmem>>) attributes {dimension_semantics = [#tpu.dimension_semantics<parallel>], iteration_bounds = array<i64: 3>, scalar_prefetch = 0 : i64, scratch_operands = 0 : i64, tpu.core_type = #tpu.core_type<tc>, window_params = [{transform_indices = @transform_0, window_bounds = array<i64: 8, 32>}, {transform_indices = @transform_1, window_bounds = array<i64: 8, 1>}, {transform_indices = @transform_2, window_bounds = array<i64: 1, 1, 1>}]} {
    %c0 = arith.constant 0 : index
    %c0_0 = arith.constant 0 : index
    %0 = vector.load %arg1[%c0, %c0_0] : memref<8x32xf32, #tpu.memory_space<vmem>>, vector<8x32xf32>
    %c0_1 = arith.constant 0 : index
    %c0_2 = arith.constant 0 : index
    %1 = vector.load %arg2[%c0_1, %c0_2] : memref<8x1xi32, #tpu.memory_space<vmem>>, vector<8x1xi32>
    %cst = arith.constant dense<0xFF800000> : vector<8xf32>
    %2 = vector.multi_reduction <maximumf>, %0, %cst [1] : vector<8x32xf32> to vector<8xf32>
    %3 = vector.shape_cast %2 : vector<8xf32> to vector<8x1xf32>
    %4 = vector.broadcast %3 : vector<8x1xf32> to vector<8x32xf32>
    %5 = arith.subf %0, %4 : vector<8x32xf32>
    %6 = math.exp %5 : vector<8x32xf32>
    %cst_3 = arith.constant dense<0.000000e+00> : vector<8xf32>
    %7 = vector.multi_reduction <add>, %6, %cst_3 [1] : vector<8x32xf32> to vector<8xf32>
    %8 = vector.shape_cast %7 : vector<8xf32> to vector<8x1xf32>
    %cst_4 = arith.constant dense<0.000000e+00> : vector<8xf32>
    %9 = vector.multi_reduction <add>, %5, %cst_4 [1] : vector<8x32xf32> to vector<8xf32>
    %10 = vector.shape_cast %9 : vector<8xf32> to vector<8x1xf32>
    %11 = math.log %8 : vector<8x1xf32>
    %12 = tpu.iota {dimensions = array<i32: 1>} : vector<8x32xi32>
    %13 = vector.broadcast %1 : vector<8x1xi32> to vector<8x32xi32>
    %14 = arith.cmpi eq, %12, %13 : vector<8x32xi32>
    %cst_5 = arith.constant 0.000000e+00 : f32
    %15 = vector.broadcast %cst_5 : f32 to vector<8x32xf32>
    %16 = arith.select %14, %5, %15 : vector<8x32xi1>, vector<8x32xf32>
    %cst_6 = arith.constant dense<0.000000e+00> : vector<8xf32>
    %17 = vector.multi_reduction <add>, %16, %cst_6 [1] : vector<8x32xf32> to vector<8xf32>
    %18 = vector.shape_cast %17 : vector<8xf32> to vector<8x1xf32>
    %cst_7 = arith.constant 1.000000e+00 : f32
    %19 = vector.broadcast %cst_7 : f32 to vector<8x1xf32>
    %20 = arith.mulf %19, %11 : vector<8x1xf32>
    %cst_8 = arith.constant 9.900000e-01 : f32
    %21 = vector.broadcast %cst_8 : f32 to vector<8x1xf32>
    %22 = arith.mulf %21, %18 : vector<8x1xf32>
    %23 = arith.subf %20, %22 : vector<8x1xf32>
    %cst_9 = arith.constant 3.125000e-04 : f32
    %24 = vector.broadcast %cst_9 : f32 to vector<8x1xf32>
    %25 = arith.mulf %24, %10 : vector<8x1xf32>
    %26 = arith.subf %23, %25 : vector<8x1xf32>
    %c2_i32 = arith.constant 2 : i32
    %27 = arith.cmpi eq, %arg0, %c2_i32 : i32
    %28 = arith.extui %27 : i1 to i32
    %c0_i32 = arith.constant 0 : i32
    %29 = arith.cmpi ne, %28, %c0_i32 : i32
    scf.if %29 {
      %c8_i32 = arith.constant 8 : i32
      %33 = arith.muli %arg0, %c8_i32 : i32
      %34 = tpu.iota {dimensions = array<i32: 0>} : vector<8x1xi32>
      %35 = vector.broadcast %33 : i32 to vector<8x1xi32>
      %36 = arith.addi %35, %34 : vector<8x1xi32>
      %c20_i32 = arith.constant 20 : i32
      %37 = vector.broadcast %c20_i32 : i32 to vector<8x1xi32>
      %38 = arith.cmpi slt, %36, %37 : vector<8x1xi32>
      %cst_12 = arith.constant 0.000000e+00 : f32
      %39 = vector.broadcast %cst_12 : f32 to vector<8x1xf32>
      %40 = arith.select %38, %26, %39 : vector<8x1xi1>, vector<8x1xf32>
      %cst_13 = arith.constant dense<0.000000e+00> : vector<1xf32>
      %41 = vector.multi_reduction <add>, %40, %cst_13 [0] : vector<8x1xf32> to vector<1xf32>
      %42 = vector.shape_cast %41 : vector<1xf32> to vector<1x1xf32>
      %c0_14 = arith.constant 0 : index
      %c0_15 = arith.constant 0 : index
      %c0_16 = arith.constant 0 : index
      %43 = vector.load %arg3[%c0_14, %c0_15, %c0_16] : memref<1x1x1xf32, #tpu.memory_space<vmem>>, vector<1x1x1xf32>
      %44 = vector.shape_cast %43 : vector<1x1x1xf32> to vector<1x1xf32>
      %45 = vector.shape_cast %42 : vector<1x1xf32> to vector<1x1x1xf32>
      tpu.vector_store %arg3[%c0_14, %c0_15, %c0_16], %45 {strides = array<i32>} : memref<1x1x1xf32, #tpu.memory_space<vmem>>, vector<1x1x1xf32>,
    } else {
    }
    %c2_i32_10 = arith.constant 2 : i32
    %30 = arith.cmpi ne, %arg0, %c2_i32_10 : i32
    %31 = arith.extui %30 : i1 to i32
    %c0_i32_11 = arith.constant 0 : i32
    %32 = arith.cmpi ne, %31, %c0_i32_11 : i32
    scf.if %32 {
      %cst_12 = arith.constant dense<0.000000e+00> : vector<1xf32>
      %33 = vector.multi_reduction <add>, %26, %cst_12 [0] : vector<8x1xf32> to vector<1xf32>
      %34 = vector.shape_cast %33 : vector<1xf32> to vector<1x1xf32>
      %c0_13 = arith.constant 0 : index
      %c0_14 = arith.constant 0 : index
      %c0_15 = arith.constant 0 : index
      %35 = vector.load %arg3[%c0_13, %c0_14, %c0_15] : memref<1x1x1xf32, #tpu.memory_space<vmem>>, vector<1x1x1xf32>
      %36 = vector.shape_cast %35 : vector<1x1x1xf32> to vector<1x1xf32>
      %37 = vector.shape_cast %34 : vector<1x1xf32> to vector<1x1x1xf32>
      tpu.vector_store %arg3[%c0_13, %c0_14, %c0_15], %37 {strides = array<i32>} : memref<1x1x1xf32, #tpu.memory_space<vmem>>, vector<1x1x1xf32>,
    } else {
    }
    return
  }
  func.func @transform_0(%arg0: i32) -> (i32, i32) {
    %c0_i32 = arith.constant 0 : i32
    %c0_i32_0 = arith.constant 0 : i32
    return %arg0, %c0_i32 : i32, i32
  }
  func.func @transform_1(%arg0: i32) -> (i32, i32) {
    %c0_i32 = arith.constant 0 : i32
    %c0_i32_0 = arith.constant 0 : i32
    return %arg0, %c0_i32 : i32, i32
  }
  func.func @transform_2(%arg0: i32) -> (i32, i32, i32) {
    %c0_i32 = arith.constant 0 : i32
    %c0_i32_0 = arith.constant 0 : i32
    %c0_i32_1 = arith.constant 0 : i32
    return %arg0, %c0_i32, %c0_i32_0 : i32, i32, i32
  }
}

</mosaic_0001>

<bundles_post_ra>
// kernel: tpu_custom_call.1
= control target key start
LH: loop header
LB: loop body
LE: loop exit
PB: predicated region body
PF: predicated region fallthrough
CT: control target
= control target key end

     0   :  { %s325_s9 = smov 0   ;;  %s360_s0 = inlined_call_operand.vmem [shape: f32[20,32], index: 0, kind: input, shape index: {}]   ;;  %s361_s1 = inlined_call_operand.vmem [shape: s32[20,1], index: 1, kind: input, shape index: {}]   ;;  %s362_s2 = inlined_call_operand.vmem [shape: f32[3,1,1], index: 2, kind: output, shape index: {}]  }
   0x1 LB: > { %s331_s10 = sadd.s32 4294967295, %s307_s9   ;;  %p279_p0 = scmp.ge.s32.totalorder %s307_s9, 1  ;;  %s307_s9 = sphi %s325_s9, %s12_s9  }
   0x2   : > { %p120_p1 = scmp.lt.s32.totalorder %s307_s9, 4 }
   0x4   : > { %p121_p2 = pnand %p279_p0, %p120_p1 }
   0x5   : > { %p143_p3 = scmp.lt.s32.totalorder (!%p121_p2), %s331_s10, 2  ;;  %v309_v0 = vmov (!%p121_p2), 0   ;;  %vm156_vm0 = vcmask (!%p121_p2), 261120   ;;  %v171_v7 = vlaneseq (!%p121_p2)  ;;  %p282_p4 = scmp.ne.s32.totalorder (!%p121_p2), %s331_s10, 2 }
   0x6   : > { %124 = sbr.rel (%p121_p2) target bundleno = 364 (0x16c), region = 28  ;;  %296 = vset.pattern.permute.xlu0 (!%p121_p2), %v309_v0 }
   0x7   : > { %v172_v8 = vand.u32 (!%p121_p2), 127, %v171_v7 }
   0xd   : > { %s144_s11 = scalar_select %p143_p3, %s331_s10, 2 }
   0xe   : > { %s283_s22 = sshll.u32 (!%p282_p4), %s331_s10, 3  ;;  %v191_v24 = vshrl.u32 (!%p282_p4), %v171_v7, 7  ;;  %vm202_vm3 = vcmask (!%p282_p4), 0  }
   0xf   : > { %s280_s12 = sshll.u32 %s144_s11, 3  ;;  %s340_s15 = scalar_lea.vmem %s362_s2, %s144_s11  ;;  %v192_v25 = vstv (!%p282_p4), %s283_s22 }
  0x10   : > { %s146_s18 = scalar_lea.vmem %s360_s0, %s280_s12  ;;  %s150_s21 = scalar_lea.vmem %s361_s1, %s280_s12  ;;  %v193_v26 = vadd.s32 (!%p282_p4), %v192_v25, %v191_v24 }
  0x11   : > { %v154_v1 = vld [vmem:[%s146_s18] sm:$0xff] }
  0x12   : > { %v157_v2 = vsel %vm156_vm0, %v154_v1, -inf  ;;  %v155_v3 = vld [vmem:[%s150_s21] sm:$0xff]  ;;  %vm194_vm2 = vcmp.lt.s32.totalorder (!%p282_p4), %v193_v26, 20 }
  0x13   : > { %158 = vmax.xlane.f32.xlu0 %v157_v2 }
  0x29   : > { %174 = vperm.xlu0 %296, %v155_v3  }
  0xa0   : > { %v159_v4 = vpop.xlane.xlu0 %158 }
  0xa1   : > { %v160_v5 = vsub.f32 %v154_v1, %v159_v4 }
  0xa3   : > { %v161_v6 = vmul.f32 1.442695, %v160_v5  ;;  %v166_v14 = vsel %vm156_vm0, %v160_v5, 0.0 }
  0xa5   : > { %297 = vpow2.f32 %v161_v6 }
  0xa8   : > { %v175_v9 = vpop.permute.xlu0 %174 }
  0xa9   : > { %vm176_vm1 = vcmp.eq.s32.totalorder %v172_v8, %v175_v9 }
  0xaa   : > { %v177_v12 = vsel %vm176_vm1, %v160_v5, 0.0 }
  0xab   : > { %v178_v13 = vsel %vm156_vm0, %v177_v12, 0.0 }
  0xaf   : > { %v298_v10 = vpop.eup %297 }
  0xb0   : > { %v163_v11 = vsel %vm156_vm0, %v298_v10, 0.0 }
  0xb1   : > { %164 = vadd.xlane.f32.xlu1 %v163_v11 }
  0xb5   : > { %179 = vadd.xlane.f32.xlu1 %v178_v13 }
  0xb9   : > { %167 = vadd.xlane.f32.xlu1 %v166_v14 }
 0x13e   : > { %v165_v15 = vpop.xlane.xlu1 %164 }
 0x13f   : > { %299 = vlog2.f32 %v165_v15 }
 0x142   : > { %v180_v16 = vpop.xlane.xlu1 %179 }
 0x143   : > { %v181_v20 = vmul.f32 0.99, %v180_v16 }
 0x146   : > { %v168_v18 = vpop.xlane.xlu1 %167 }
 0x147   : > { %v183_v22 = vmul.f32 0.0003125, %v168_v18 }
 0x148   : > { %188 = sbr.rel (%p282_p4) target bundleno = 350 (0x15e), region = 32 }
 0x149   : > { %v300_v17 = vpop.eup %299 }
 0x14a   : > { %v170_v19 = vmul.f32 0.6931472, %v300_v17 }
 0x14c   : > { %v182_v21 = vsub.f32 %v170_v19, %v181_v20 }
 0x14e   : > { %v184_v23 = vsub.f32 %v182_v21, %v183_v22 }
 0x150   : > { %v195_v27 = vsel %vm194_vm2, %v184_v23, 0.0 }
 0x151   : > { %v196_v28 = vrot.slane %v195_v27, 4 }
 0x153   : > { %v197_v29 = vadd.f32 %v196_v28, %v195_v27 }
 0x155   : > { %v198_v30 = vrot.slane %v197_v29, 2 }
 0x157   : > { %v199_v31 = vadd.f32 %v198_v30, %v197_v29 }
 0x159   : > { %v200_v32 = vrot.slane %v199_v31, 1 }
 0x15b   : > { %v201_v33 = vadd.f32 %v200_v32, %v199_v31 }
 0x15d   : > { %203 = vst.msk [vmem:[%s340_s15] sm:$0x1] %vm202_vm3, %v201_v33 }
 0x15e PF: > { %p284_p5 = scmp.eq.s32.totalorder %s331_s10, 2 }
 0x15f   : > { %v208_v34 = vrot.slane (!%p284_p5), %v184_v23, 4  ;;  %vm214_vm4 = vcmask (!%p284_p5), 0  }
 0x160   : > { %207 = sbr.rel (%p284_p5) target bundleno = 364 (0x16c), region = 36 }
 0x161   : > { %v209_v35 = vadd.f32 (!%p284_p5), %v208_v34, %v184_v23 }
 0x163   : > { %v210_v36 = vrot.slane (!%p284_p5), %v209_v35, 2 }
 0x165   : > { %v211_v37 = vadd.f32 (!%p284_p5), %v210_v36, %v209_v35 }
 0x167   : > { %v212_v38 = vrot.slane %v211_v37, 1 }
 0x169   : > { %v213_v39 = vadd.f32 %v212_v38, %v211_v37 }
 0x16b   : > { %215 = vst.msk [vmem:[%s340_s15] sm:$0x1] %vm214_vm4, %v213_v39 }
 0x16c PF: > { %s12_s9 = sadd.s32 1, %s307_s9  }
 0x16d   : > { %p9_p6 = scmp.ge.s32.totalorder %s12_s9, 5  }
 0x16f   :  { %11 = sbr.rel (!%p9_p6) target bundleno = 1 (0x1), region = 69 }

</bundles_post_ra>
